<compile_context>
chip_gen: v7x
topology: tpu7x:2x2x1
jax: 0.10.0
libtpu: 0.0.40
codegen_flags: <defaults>
</compile_context>

<pallas_src>
import jax
import jax.numpy as jnp
from jax import lax
from jax.experimental import pallas as pl
from jax.experimental.pallas import tpu as pltpu


def _prop_kernel(pt_ref, w_ref, b_ref, x_ref, o_ref):
    bb, C, D = x_ref.shape            # D = V * L (lane-dense)

    # ---- graph propagation (gdep folded into M), as a single lane-dense right-multiply:
    #      h[n, c, v*L + l] = sum_w M[v, w] * x[n, c, w*L + l]  ==  x_flat @ kron(M^T, I_L)
    x2 = x_ref[...].reshape(bb * C, D)                                   # free view
    h2 = jnp.dot(x2, pt_ref[...], preferred_element_type=jnp.float32)   # (bb*C, D) f32 acc
    h = h2.reshape(bb, C, D).astype(w_ref.dtype)                         # bf16 for 2nd MXU pass

    w = w_ref[...]                     # (O, C), already matmul dtype (cast in wrapper)
    bias = b_ref[...]                  # (O, 1) f32
    # ---- 1x1 conv (channel mix): per batch row, (O, C) @ (C, D) + b.
    # bb is a tiny static constant -> unrolled; avoids the transpose a batched dot_general
    # would introduce.  Bias add and store stay f32-accurate.
    for n in range(bb):
        y = jnp.dot(w, h[n], preferred_element_type=jnp.float32)         # (O, D) f32
        o_ref[n] = (y + bias).astype(o_ref.dtype)                        # lane-dense store


def _guess_num_tensorcores():
    """Heuristic TC-per-chip count (only used to pick batch blocking; any value is correct)."""
    try:
        kind = jax.devices()[0].device_kind.lower()
    except Exception:
        return 1
    return 2 if any(t in kind for t in ("v7", "v5p", "v4")) else 1


def prop_forward(x, adj, w, b, *, gdep, alpha, matmul_dtype=jnp.bfloat16):
    N, C, V, L = x.shape
    O = w.shape[0]
    D = V * L

    # ---- batch-invariant precompute, hoisted out of the kernel (one fused XLA pass) ----
    eye_v = jnp.eye(V, dtype=jnp.float32)
    adj_i = adj.astype(jnp.float32) + eye_v
    a = adj_i / jnp.sum(adj_i, axis=1, keepdims=True)        # row-normalized adjacency
    # Fold the gdep recursion  h <- alpha*x + (1-alpha)*a@h  into one (V, V) operator M.
    m = eye_v
    for _ in range(gdep):
        m = alpha * eye_v + (1.0 - alpha) * jnp.matmul(
            a, m, precision=lax.Precision.HIGHEST)
    # Right-multiply operator: h_flat = x_flat @ kron(M, I_L)^T = x_flat @ kron(M^T, I_L).
    pt = jnp.kron(m.T, jnp.eye(L, dtype=jnp.float32)).astype(matmul_dtype)   # (D, D)

    w2 = w.astype(matmul_dtype)                              # (O, C) conv weight, MXU dtype
    b2 = b.astype(jnp.float32).reshape(O, 1)                 # (O, 1) f32 bias
    x2 = x.astype(matmul_dtype).reshape(N, C, D)             # free view; lane-dense last dim

    # Batch rows per grid step: all N in one step on 1-TC chips, >= 2 blocks on multi-TC chips.
    num_tc = _guess_num_tensorcores()
    bb = min(N, max(1, pl.cdiv(N, num_tc)))
    grid = (pl.cdiv(N, bb),)

    in_itemsize = jnp.dtype(matmul_dtype).itemsize
    out_itemsize = jnp.dtype(x.dtype).itemsize
    flops = N * (2 * C * D * D + 2 * O * C * D)              # node mix (kron form) + channel mix
    bytes_accessed = (in_itemsize * (N * C * D + D * D + O * C)
                      + 4 * O + out_itemsize * (N * O * D))

    out = pl.pallas_call(
        _prop_kernel,
        out_shape=jax.ShapeDtypeStruct((N, O, D), x.dtype),
        grid_spec=pltpu.PrefetchScalarGridSpec(
            num_scalar_prefetch=0,
            grid=grid,
            in_specs=[
                pl.BlockSpec((D, D), lambda n: (0, 0)),            # kron(M^T, I_L), resident
                pl.BlockSpec((O, C), lambda n: (0, 0)),            # conv weight
                pl.BlockSpec((O, 1), lambda n: (0, 0)),            # conv bias
                pl.BlockSpec((bb, C, D), lambda n: (n, 0, 0)),     # x slab, lane-dense
            ],
            out_specs=pl.BlockSpec((bb, O, D), lambda n: (n, 0, 0)),  # lane-dense output slab
        ),
        compiler_params=pltpu.CompilerParams(
            dimension_semantics=("parallel",),
        ),
        cost_estimate=pl.CostEstimate(
            flops=flops, transcendentals=0, bytes_accessed=bytes_accessed),
    )(pt, w2, b2, x2)

    return out.reshape(N, O, V, L)                           # free view back to NCVL


def prop_reference(x, adj, w, b, gdep, alpha):
    """Pure-JAX f32 reference mirroring the PyTorch forward (explicit gdep loop)."""
    V = adj.shape[0]
    adj_i = adj + jnp.eye(V, dtype=adj.dtype)
    d = adj_i.sum(axis=1)
    a = adj_i / d[:, None]
    h = x
    for _ in range(gdep):
        h = alpha * x + (1.0 - alpha) * jnp.einsum("ncwl,vw->ncvl", h, a)
    return jnp.einsum("oc,ncvl->novl", w, h) + b[None, :, None, None]


if __name__ == "__main__":
    # Module hyperparameters (prop(c_in, c_out, gdep, dropout, alpha)).
    C_IN, C_OUT, GDEP, DROPOUT, ALPHA = 4, 8, 2, 0.1, 0.05  # dropout unused in forward
    N, V, L = 2, 8, 16                                       # V*L = 128 -> one full lane tile

    key = jax.random.PRNGKey(0)
    k1, k2, k3, k4 = jax.random.split(key, 4)
    x = jax.random.normal(k1, (N, C_IN, V, L), jnp.float32)
    adj = jax.random.uniform(k2, (V, V), jnp.float32)        # nonnegative adjacency
    # Deterministic synthetic Conv2d(1x1) parameters (weight (O, C, 1, 1) -> (O, C)).
    w = 0.3 * jax.random.normal(k3, (C_OUT, C_IN), jnp.float32)
    b = 0.1 * jax.random.normal(k4, (C_OUT,), jnp.float32)

    out = prop_forward(x, adj, w, b, gdep=GDEP, alpha=ALPHA)
    out = jax.block_until_ready(out)

    ref = prop_reference(x, adj, w, b, GDEP, ALPHA)
    assert out.shape == (N, C_OUT, V, L), out.shape
    # bf16 MXU operands + gdep folding reassociate arithmetic; accumulation stays f32,
    # so errors are a few e-3 of unit-scale values -> relaxed tolerance.
    err = float(jnp.abs(out - ref).max())
    assert jnp.allclose(out, ref, atol=5e-2, rtol=5e-2), err
    print("KERNEL_OK")
</pallas_src>

<mosaic_0001>
module attributes {stable_mosaic.version = 11 : i64} {
  func.func @_prop_kernel(%arg0: i32, %arg1: memref<128x128xbf16, #tpu.memory_space<vmem>>, %arg2: memref<8x4xbf16, #tpu.memory_space<vmem>>, %arg3: memref<8x1xf32, #tpu.memory_space<vmem>>, %arg4: memref<2x4x128xbf16, #tpu.memory_space<vmem>>, %arg5: memref<2x8x128xf32, #tpu.memory_space<vmem>>) attributes {dimension_semantics = [#tpu.dimension_semantics<parallel>], iteration_bounds = array<i64: 1>, scalar_prefetch = 0 : i64, scratch_operands = 0 : i64, tpu.core_type = #tpu.core_type<tc>, window_params = [{pipeline_mode = #tpu.pipeline_mode<synchronous>, transform_indices = @transform_0, window_bounds = array<i64: 128, 128>}, {pipeline_mode = #tpu.pipeline_mode<synchronous>, transform_indices = @transform_1, window_bounds = array<i64: 8, 4>}, {pipeline_mode = #tpu.pipeline_mode<synchronous>, transform_indices = @transform_2, window_bounds = array<i64: 8, 1>}, {transform_indices = @transform_3, window_bounds = array<i64: 2, 4, 128>}, {transform_indices = @transform_4, window_bounds = array<i64: 2, 8, 128>}]} {
    %c0 = arith.constant 0 : index
    %c0_0 = arith.constant 0 : index
    %c0_1 = arith.constant 0 : index
    %0 = vector.load %arg4[%c0, %c0_0, %c0_1] : memref<2x4x128xbf16, #tpu.memory_space<vmem>>, vector<2x4x128xbf16>
    %1 = vector.shape_cast %0 : vector<2x4x128xbf16> to vector<8x128xbf16>
    %c0_2 = arith.constant 0 : index
    %c0_3 = arith.constant 0 : index
    %2 = vector.load %arg1[%c0_2, %c0_3] : memref<128x128xbf16, #tpu.memory_space<vmem>>, vector<128x128xbf16>
    %cst = arith.constant dense<0.000000e+00> : vector<8x128xf32>
    %3 = tpu.matmul %1, %2, %cst {dimension_numbers = #tpu.dot_dimension_numbers<[1], [0], [0], [1], [0, 0, 1, 1], [], []>} : vector<8x128xbf16>, vector<128x128xbf16>, vector<8x128xf32> -> vector<8x128xf32>
    %4 = vector.shape_cast %3 : vector<8x128xf32> to vector<2x4x128xf32>
    %5 = arith.truncf %4 : vector<2x4x128xf32> to vector<2x4x128xbf16>
    %c0_4 = arith.constant 0 : index
    %c0_5 = arith.constant 0 : index
    %6 = vector.load %arg2[%c0_4, %c0_5] : memref<8x4xbf16, #tpu.memory_space<vmem>>, vector<8x4xbf16>
    %c0_6 = arith.constant 0 : index
    %c0_7 = arith.constant 0 : index
    %7 = vector.load %arg3[%c0_6, %c0_7] : memref<8x1xf32, #tpu.memory_space<vmem>>, vector<8x1xf32>
    %8 = vector.extract_strided_slice %5 {offsets = [0, 0, 0], sizes = [1, 4, 128], strides = [1, 1, 1]} : vector<2x4x128xbf16> to vector<1x4x128xbf16>
    %9 = vector.shape_cast %8 : vector<1x4x128xbf16> to vector<4x128xbf16>
    %cst_8 = arith.constant dense<0.000000e+00> : vector<8x128xf32>
    %10 = tpu.matmul %6, %9, %cst_8 {dimension_numbers = #tpu.dot_dimension_numbers<[1], [0], [0], [1], [0, 0, 1, 1], [], []>} : vector<8x4xbf16>, vector<4x128xbf16>, vector<8x128xf32> -> vector<8x128xf32>
    %11 = vector.broadcast %7 : vector<8x1xf32> to vector<8x128xf32>
    %12 = arith.addf %10, %11 : vector<8x128xf32>
    %c0_9 = arith.constant 0 : index
    %c0_10 = arith.constant 0 : index
    %c0_11 = arith.constant 0 : index
    %13 = vector.load %arg5[%c0_9, %c0_10, %c0_11] : memref<2x8x128xf32, #tpu.memory_space<vmem>>, vector<1x8x128xf32>
    %14 = vector.shape_cast %13 : vector<1x8x128xf32> to vector<8x128xf32>
    %15 = vector.shape_cast %12 : vector<8x128xf32> to vector<1x8x128xf32>
    tpu.vector_store %arg5[%c0_9, %c0_10, %c0_11], %15 {strides = array<i32>} : memref<2x8x128xf32, #tpu.memory_space<vmem>>, vector<1x8x128xf32>,
    %16 = vector.extract_strided_slice %5 {offsets = [1, 0, 0], sizes = [1, 4, 128], strides = [1, 1, 1]} : vector<2x4x128xbf16> to vector<1x4x128xbf16>
    %17 = vector.shape_cast %16 : vector<1x4x128xbf16> to vector<4x128xbf16>
    %cst_12 = arith.constant dense<0.000000e+00> : vector<8x128xf32>
    %18 = tpu.matmul %6, %17, %cst_12 {dimension_numbers = #tpu.dot_dimension_numbers<[1], [0], [0], [1], [0, 0, 1, 1], [], []>} : vector<8x4xbf16>, vector<4x128xbf16>, vector<8x128xf32> -> vector<8x128xf32>
    %19 = vector.broadcast %7 : vector<8x1xf32> to vector<8x128xf32>
    %20 = arith.addf %18, %19 : vector<8x128xf32>
    %c1 = arith.constant 1 : index
    %c0_13 = arith.constant 0 : index
    %c0_14 = arith.constant 0 : index
    %21 = vector.load %arg5[%c1, %c0_13, %c0_14] : memref<2x8x128xf32, #tpu.memory_space<vmem>>, vector<1x8x128xf32>
    %22 = vector.shape_cast %21 : vector<1x8x128xf32> to vector<8x128xf32>
    %23 = vector.shape_cast %20 : vector<8x128xf32> to vector<1x8x128xf32>
    tpu.vector_store %arg5[%c1, %c0_13, %c0_14], %23 {strides = array<i32>} : memref<2x8x128xf32, #tpu.memory_space<vmem>>, vector<1x8x128xf32>,
    return
  }
  func.func @transform_0(%arg0: i32) -> (i32, i32) {
    %c0_i32 = arith.constant 0 : i32
    %c0_i32_0 = arith.constant 0 : i32
    %c0_i32_1 = arith.constant 0 : i32
    return %c0_i32, %c0_i32_0 : i32, i32
  }
  func.func @transform_1(%arg0: i32) -> (i32, i32) {
    %c0_i32 = arith.constant 0 : i32
    %c0_i32_0 = arith.constant 0 : i32
    %c0_i32_1 = arith.constant 0 : i32
    return %c0_i32, %c0_i32_0 : i32, i32
  }
  func.func @transform_2(%arg0: i32) -> (i32, i32) {
    %c0_i32 = arith.constant 0 : i32
    %c0_i32_0 = arith.constant 0 : i32
    %c0_i32_1 = arith.constant 0 : i32
    return %c0_i32, %c0_i32_0 : i32, i32
  }
  func.func @transform_3(%arg0: i32) -> (i32, i32, i32) {
    %c0_i32 = arith.constant 0 : i32
    %c0_i32_0 = arith.constant 0 : i32
    %c0_i32_1 = arith.constant 0 : i32
    return %arg0, %c0_i32, %c0_i32_0 : i32, i32, i32
  }
  func.func @transform_4(%arg0: i32) -> (i32, i32, i32) {
    %c0_i32 = arith.constant 0 : i32
    %c0_i32_0 = arith.constant 0 : i32
    %c0_i32_1 = arith.constant 0 : i32
    return %arg0, %c0_i32, %c0_i32_0 : i32, i32, i32
  }
}

</mosaic_0001>

<bundles_post_ra>
// kernel: tpu_custom_call.1
= control target key start
LH: loop header
LB: loop body
LE: loop exit
PB: predicated region body
PF: predicated region fallthrough
CT: control target
= control target key end

     0   :  { %9 = vsyncpa [#allocation3], 0  ;;  %s469_s0 = inlined_call_operand.hbm [shape: bf16[128,128], index: 0, kind: input, shape index: {}]   ;;  %s470_s1 = inlined_call_operand.vmem [shape: bf16[8,4], index: 1, kind: input, shape index: {}]   ;;  %s471_s2 = inlined_call_operand.vmem [shape: f32[8,1], index: 2, kind: input, shape index: {}]   ;;  %s472_s3 = inlined_call_operand.vmem [shape: bf16[2,4,128], index: 3, kind: input, shape index: {}]   ;;  %s473_s4 = inlined_call_operand.hbm [shape: f32[2,8,128], index: 4, kind: output, shape index: {}]  }
   0x1   :  { %10 = vsyncpa [#allocation4], 0  ;;  %s395_s15 = smov [#allocation2]   ;;  %s347_s19 = scalar_lea.hbm %s469_s0, 1024 }
   0x2   :  { %s16_s16 = sshll.u32 %s395_s15, 4  ;;  %p348_p0 = scmp.ne.s32.totalorder %s469_s0, %s347_s19  ;;  %s17_s16 = int_to_ptr.vmem [resolvable:$true] %s16_s16 }
   0x3   :  { %p351_p1 = scmp.lt.u32.totalorder %s347_s19, %s469_s0 }
   0x5   :  { %p353_p2 = pnand %p351_p1, %p348_p0 }
   0x7   :  { %356 = shalt.err (!%p353_p2)
}
   0x8   :  { %s357_s24 = scalar_lea.vmem %s17_s16, 1024  ;;  %p362_p4 = scmp.lt.s32.totalorder %s17_s16, %s17_s16 }
   0x9   :  { %p358_p3 = scmp.ne.s32.totalorder %s17_s16, %s357_s24  ;;  %p363_p5 = scmp.lt.s32.totalorder %s357_s24, %s357_s24 }
   0xb   :  { %p364_p6 = por %p363_p5, %p362_p4 }
   0xd   :  { %p365_p7 = pnand %p364_p6, %p358_p3 }
   0xf   :  { %368 = shalt.err (!%p365_p7)
}
  0x10   :  { %s396_s25 = smov 64   ;;  %s397_s26 = smov 4  }
  0x11   :  { %22 = dma.hbm_to_vmem [thread:$0]  %s469_s0, 1024, %s17_s16, [#allocation3], %s396_s25, %s396_s25, %s397_s26  }
  0x12   :  { %391 = dma.done.wait [#allocation3], 1024  }
  0x13   :  { %392 = vsyncadd [#allocation3], 4294966272  ;;  %v398_v0 = vmov 0.0   ;;  %vm399_vm0 = vmmov 0   ;;  %v339_v1 = vld [vmem:[#allocation2] sm:$0xff]   ;;  %v340_v2 = vld [vmem:[#allocation2 + $0x8] sm:$0xff]   ;;  %v57_v8 = vlaneseq }
  0x14   :  { %296 = vmatprep.subr.bf16.mxu0 %v398_v0  ;;  %312 = vmatprep.mubr.msk.bf16.mxu0 %vm399_vm0, %v398_v0  ;;  %v341_v3 = vld [vmem:[#allocation2 + $0x10] sm:$0xff]   ;;  %v342_v4 = vld [vmem:[#allocation2 + $0x18] sm:$0xff]   ;;  %v343_v5 = vld [vmem:[#allocation2 + $0x20] sm:$0xff]   ;;  %v400_v6 = vmov 1983009808   ;;  %v401_v20 = vmov 0  }
  0x15   :  { %316 = vmatprep.subr.bf16.mxu1 %v398_v0  ;;  %318 = vmatprep.mubr.msk.bf16.mxu1 %vm399_vm0, %v398_v0  ;;  %v55_v7 = vunpack.c.l.s4 %v400_v6  ;;  %v344_v9 = vld [vmem:[#allocation2 + $0x28] sm:$0xff]   ;;  %v58_v11 = vshrl.u32 %v57_v8, 7  ;;  %v345_v12 = vld [vmem:[#allocation2 + $0x30] sm:$0xff]   ;;  %v33_v13 = vld [vmem:[%s472_s3] sm:$0x3]  ;;  %vm166_vm1 = vcmask 1041408  }
  0x16   :  { %297 = vmatpush3.bf16.msra.mxu0 %v339_v1  ;;  %v34_v14 = vld [vmem:[%s472_s3 + $0x2] sm:$0x3]  ;;  %v346_v17 = vld [vmem:[#allocation2 + $0x38] sm:$0xff]   ;;  %338 = vset.pattern.permute.xlu0 %v401_v20  ;;  %vm162_vm2 = vcmask 31744  }
  0x17   :  { %298 = vmatprep.subr.bf16.mxu0 %v398_v0  ;;  %v56_v10 = vunpack.c.0.s8 %v55_v7  ;;  %v53_v15 = vcombine.low %v33_v13, %v34_v14  ;;  %v156_v19 = vld [vmem:[%s471_s2] sm:$0xff]  ;;  %s402_s2 = smov [#allocation5]  }
  0x18   :  { %159 = vperm.xlu0 %338, %v156_v19   ;;  %v155_v29 = vld [vmem:[%s470_s1] sm:$0xf]  ;;  %s261_s9 = sshll.u32 %s402_s2, 4  ;;  %s262_s9 = int_to_ptr.vmem [resolvable:$true] %s261_s9 }
  0x19   :  { %v59_v16 = vsub.s32 %v56_v10, %v58_v11  ;;  %s369_s1 = scalar_lea.vmem %s262_s9, 256  ;;  %p374_p9 = scmp.lt.s32.totalorder %s262_s9, %s262_s9 }
  0x1a   :  { %299 = vmatpush3.bf16.msra.mxu0 %v340_v2  ;;  %p370_p8 = scmp.ne.s32.totalorder %s262_s9, %s369_s1  ;;  %p375_p10 = scmp.lt.s32.totalorder %s369_s1, %s369_s1 }
  0x1b   :  { %300 = vmatprep.subr.bf16.mxu0 %v398_v0  ;;  %v60_v18 = vrot.slane %v53_v15, %v59_v16 }
  0x1c   :  { %p376_p11 = por %p375_p10, %p374_p9 }
  0x1e   :  { %301 = vmatpush3.bf16.msra.mxu0 %v341_v3  ;;  %p377_p12 = pnand %p376_p11, %p370_p8 }
  0x1f   :  { %302 = vmatprep.subr.bf16.mxu0 %v398_v0 }
  0x22   :  { %303 = vmatpush3.bf16.msra.mxu0 %v342_v4 }
  0x23   :  { %304 = vmatprep.subr.bf16.mxu0 %v398_v0 }
  0x26   :  { %305 = vmatpush3.bf16.msra.mxu0 %v343_v5 }
  0x27   :  { %306 = vmatprep.subr.bf16.mxu0 %v398_v0 }
  0x2a   :  { %307 = vmatpush3.bf16.msra.mxu0 %v344_v9 }
  0x2b   :  { %308 = vmatprep.subr.bf16.mxu0 %v398_v0 }
  0x2e   :  { %309 = vmatpush3.bf16.msra.mxu0 %v345_v12 }
  0x2f   :  { %310 = vmatprep.subr.bf16.mxu0 %v398_v0 }
  0x32   :  { %311 = vmatpush3.bf16.msra.mxu0 %v346_v17 }
  0x35   :  { %313 = vmatmul.mubr.bf16.vlgmr.msra.gmra.mrb[0].mxu0 %v60_v18 }
  0x97   :  { %v160_v31 = vpop.permute.xlu0 %159 }
 0x108   :  { %v144_v21 = vpop.f32.mrb[0].mxu0 }
 0x109   :  { %v151_v22 = vcombine.high %v144_v21, %v144_v21  ;;  %v153_v23 = vpack.c.bf16 %v144_v21, %v144_v21  ;;  %v314_v24 = vpop.f32.mrb[1].mxu0 }
 0x10a   :  { %v147_v25 = vpop.f32.mrb[2].mxu0 }
 0x10b   :  { %v154_v26 = vpack.c.bf16 %v151_v22, %v151_v22  ;;  %v315_v27 = vpop.f32.mrb[3].mxu0  ;;  %v168_v28 = vsel %vm166_vm1, %v153_v23, 0 }
 0x10c   :  { %317 = vmatpush3.bf16.msra.mxu1 %v168_v28 }
 0x10d   :  { %322 = vmatprep.subr.bf16.mxu1 %v398_v0  ;;  %v212_v30 = vsel %vm166_vm1, %v154_v26, 0 }
 0x10f   :  { %319 = vmatmul.mubr.msk.bf16.vlgmr.msra.gmra.mrb[0].mxu1 %vm162_vm2, %v155_v29 }
 0x110   :  { %323 = vmatpush3.bf16.msra.mxu1 %v212_v30  ;;  %324 = vmatprep.mubr.msk.bf16.mxu1 %vm399_vm0, %v398_v0 }
 0x117   :  { %325 = vmatmul.mubr.msk.bf16.vlgmr.msra.gmra.mrb[4].mxu1 %vm162_vm2, %v155_v29 }
 0x1e2   :  { %v204_v32 = vpop.f32.mrb[0].mxu1 }
 0x1e3   :  { %v205_v33 = vadd.f32 %v204_v32, %v160_v31  ;;  %v320_v34 = vpop.f32.mrb[1].mxu1 }
 0x1e4   :  { %v207_v35 = vpop.f32.mrb[2].mxu1 }
 0x1e5   :  { %210 = vst [vmem:[#allocation5] sm:$0xff] %v205_v33  ;;  %v321_v36 = vpop.f32.mrb[3].mxu1 }
 0x1ea   :  { %v248_v37 = vpop.f32.mrb[4].mxu1 }
 0x1eb   :  { %v249_v38 = vadd.f32 %v248_v37, %v160_v31  ;;  %v326_v39 = vpop.f32.mrb[5].mxu1 }
 0x1ec   :  { %v251_v40 = vpop.f32.mrb[6].mxu1 }
 0x1ed   :  { %255 = vst [vmem:[#allocation5 + $0x8] sm:$0xff] %v249_v38  ;;  %v327_v41 = vpop.f32.mrb[7].mxu1 }
 0x1ee   :  { %380 = shalt.err (!%p377_p12)
}
 0x1ef   :  { %s381_s12 = scalar_lea.hbm %s473_s4, 256 }
 0x1f0   :  { %p382_p13 = scmp.ne.s32.totalorder %s473_s4, %s381_s12  ;;  %p385_p0 = scmp.lt.u32.totalorder %s381_s12, %s473_s4 }
 0x1f2   :  { %p387_p1 = pnand %p385_p0, %p382_p13 }
 0x1f4   :  { %390 = shalt.err (!%p387_p1)
}
 0x1f5   :  { %s403_s17 = smov 128   ;;  %s404_s18 = smov 8  }
 0x1f6   :  { %267 = dma.vmem_to_hbm [thread:$0]  %s262_s9, 256, %s473_s4, [#allocation4], %s403_s17, %s403_s17, %s404_s18  }
 0x1f7   :  { %393 = dma.done.wait [#allocation4], 256  }
 0x1f8   :  { %394 = vsyncadd [#allocation4], 4294967040 }
 0x1f9   :  { %271 = vsyncpa [#allocation3], 1 }
 0x1fa   :  { %272 = vsyncpa [#allocation4], 1 }

</bundles_post_ra>
